<compile_context>
chip_gen: v7x
topology: tpu7x:2x2x1
jax: 0.10.0
libtpu: 0.0.40
codegen_flags: <defaults>
</compile_context>

<pallas_src>
import jax
import jax.numpy as jnp
from jax.experimental import pallas as pl
from jax.experimental.pallas import tpu as pltpu

LANE = 128
VMEM_LIMIT = 64 * 1024 * 1024


def _round_up(x: int, m: int) -> int:
    return ((x + m - 1) // m) * m


# ---------------------------------------------------------------------------
# Fused MLP encoder kernel (stand-in for the injected `gnn` module).
# One grid step = one (node-type, row-tile) pair; all layers stay in VMEM/vregs.
# ---------------------------------------------------------------------------
def _fused_mlp_kernel(*refs):
    """refs = (x_ref, w0, b0, w1, b1, ..., wL, bL, o_ref)."""
    x_ref, *wb_refs, o_ref = refs
    n_layers = len(wb_refs) // 2
    h = x_ref[...]                                    # bf16 (tile_m, Din_pad)
    for i in range(n_layers):                         # small fixed depth -> static unroll
        w = wb_refs[2 * i][...]                       # bf16 (K_pad, N_pad), pre-transposed
        b = wb_refs[2 * i + 1][...]                   # f32  (1, N_pad)
        h = jnp.dot(h, w, preferred_element_type=jnp.float32) + b
        if i < n_layers - 1:
            h = jnp.maximum(h, 0.0).astype(jnp.bfloat16)   # MXU-native input for next layer
    o_ref[...] = h.astype(o_ref.dtype)


def encode_all_node_types(x_dict, enc_params, *, tile_m: int = 256):
    """Encode every node type in a single pallas_call.

    Returns a padded slab (T, M_pad, Dout_pad) f32; padded lanes are exactly 0 and
    padded rows are never indexed downstream (no slice copy back to HBM).
    """
    node_types = enc_params["node_types"]
    ws, bs = enc_params["w"], enc_params["b"]         # per layer: (T,K_pad,N_pad)/(T,1,N_pad)
    T = len(node_types)
    Din_pad = ws[0].shape[1]
    Dout_pad = ws[-1].shape[2]

    M_max = max(x_dict[nt].shape[0] for nt in node_types)
    tile_m = min(tile_m, _round_up(M_max, LANE))      # don't over-pad tiny inputs
    M_pad = _round_up(M_max, tile_m)

    x_all = jnp.stack([
        jnp.pad(x_dict[nt].astype(jnp.float32),
                ((0, M_pad - x_dict[nt].shape[0]),
                 (0, Din_pad - x_dict[nt].shape[1])))
        for nt in node_types]).astype(jnp.bfloat16)   # (T, M_pad, Din_pad)

    in_specs = [pl.BlockSpec((None, tile_m, Din_pad), lambda t, i: (t, i, 0))]
    operands = [x_all]
    for w, b in zip(ws, bs):
        K, N = w.shape[1], w.shape[2]
        # Weight/bias blocks only change with the node-type grid axis, so they stay
        # VMEM-resident across the inner row-tile axis.
        # TODO(synk): for large hidden dims on v7x (64 MiB VMEM) stage weights
        # single-buffered (pl.Buffered(1)) or in a VMEM scratch instead of the
        # default double-buffered pipeline slots.
        in_specs.append(pl.BlockSpec((None, K, N), lambda t, i: (t, 0, 0)))
        in_specs.append(pl.BlockSpec((None, 1, N), lambda t, i: (t, 0, 0)))
        operands += [w, b]

    # Cost estimate from real (unpadded) dims.
    flops = 0
    bytes_accessed = 0
    for nt in node_types:
        M = x_dict[nt].shape[0]
        bytes_accessed += M * x_dict[nt].shape[1] * 2                 # bf16 activations in
        for fan_in, fan_out in enc_params["layer_dims"][nt]:
            flops += 2 * M * fan_in * fan_out
            bytes_accessed += fan_in * fan_out * 2 + fan_out * 4      # bf16 w, f32 b
        bytes_accessed += M * enc_params["layer_dims"][nt][-1][1] * 4  # f32 emb out

    out = pl.pallas_call(
        _fused_mlp_kernel,
        out_shape=jax.ShapeDtypeStruct((T, M_pad, Dout_pad), jnp.float32),
        grid=(T, M_pad // tile_m),
        in_specs=in_specs,
        out_specs=pl.BlockSpec((None, tile_m, Dout_pad), lambda t, i: (t, i, 0)),
        compiler_params=pltpu.CompilerParams(
            dimension_semantics=("parallel", "parallel"),
            vmem_limit_bytes=VMEM_LIMIT),
        cost_estimate=pl.CostEstimate(flops=flops, transcendentals=0,
                                      bytes_accessed=bytes_accessed),
    )(*operands)
    return out


# ---------------------------------------------------------------------------
# LinkClassifier kernel: per-edge dot product, all edge types in one call,
# lane-dense (1, tile_e) score output.
# ---------------------------------------------------------------------------
def _edge_score_kernel(f1_ref, f2_ref, o_ref):
    prod = f1_ref[...] * f2_ref[...]                  # (tile_e, D_pad) f32
    # Transpose the product tile (XLU) so the per-edge reduction runs over the
    # sublane axis and lands directly in a lane-dense (1, tile_e) row
    # (unmasked vst instead of (tile_e, 1) masked partial stores).
    o_ref[...] = jnp.sum(prod.T, axis=0, keepdims=True)


def edge_scores_batched(feat1_list, feat2_list, *, tile_e: int = 512, d_real=None):
    """feat{1,2}_list: per-edge-type gathered endpoint features (E_t, D_pad) f32.

    Returns a list of per-edge-type score vectors (E_t,) f32.
    """
    T = len(feat1_list)
    D_pad = feat1_list[0].shape[1]
    lens = [f.shape[0] for f in feat1_list]
    E_max = max(lens)
    tile_e = min(tile_e, _round_up(E_max, LANE))
    E_pad = _round_up(E_max, tile_e)

    def pad_stack(fs):
        return jnp.stack([jnp.pad(f, ((0, E_pad - f.shape[0]), (0, 0))) for f in fs])

    f1 = pad_stack(feat1_list)                        # (T, E_pad, D_pad)
    f2 = pad_stack(feat2_list)

    d = D_pad if d_real is None else d_real
    flops = sum(2 * e * d for e in lens)
    bytes_accessed = sum(2 * e * D_pad * 4 + e * 4 for e in lens)

    out = pl.pallas_call(
        _edge_score_kernel,
        out_shape=jax.ShapeDtypeStruct((T, 1, E_pad), jnp.float32),
        grid=(T, E_pad // tile_e),
        in_specs=[pl.BlockSpec((None, tile_e, D_pad), lambda t, i: (t, i, 0)),
                  pl.BlockSpec((None, tile_e, D_pad), lambda t, i: (t, i, 0))],
        out_specs=pl.BlockSpec((None, 1, tile_e), lambda t, i: (t, 0, i)),
        compiler_params=pltpu.CompilerParams(
            dimension_semantics=("parallel", "parallel"),
            vmem_limit_bytes=VMEM_LIMIT),
        cost_estimate=pl.CostEstimate(flops=flops, transcendentals=0,
                                      bytes_accessed=bytes_accessed),
    )(f1, f2)
    return [out[t, 0, :lens[t]] for t in range(T)]


# ---------------------------------------------------------------------------
# Parameters (deterministic, PyTorch-Linear-like init), kernel-ready layout.
# ---------------------------------------------------------------------------
def init_params(key, feature_dims, hidden_dim, output_dim, num_hidden_layers):
    """feature_dims: {node_type: input_dim}.  Returns (raw_params_dict, enc_params).

    raw_params_dict: {nt: [(w (out,in), b (out,)), ...]} PyTorch layout (reference math).
    enc_params: stacked, transposed, zero-padded, bf16-cast weights shared by all node
    types (done ONCE here, never per forward).
    """
    node_types = list(feature_dims.keys())
    n_layers = num_hidden_layers + 1
    raw, layer_dims = {}, {}
    for nt in node_types:
        dims = [(feature_dims[nt], hidden_dim)]
        dims += [(hidden_dim, hidden_dim)] * (num_hidden_layers - 1)
        dims += [(hidden_dim, output_dim)]
        layer_dims[nt] = dims
        layers = []
        for fan_in, fan_out in dims:
            key, wk, bk = jax.random.split(key, 3)
            bound = 1.0 / (fan_in ** 0.5)
            w = jax.random.uniform(wk, (fan_out, fan_in), jnp.float32, -bound, bound)
            b = jax.random.uniform(bk, (fan_out,), jnp.float32, -bound, bound)
            layers.append((w, b))
        raw[nt] = layers

    # Common padded layer widths across node types (all types share one kernel).
    k_pads = [max(_round_up(layer_dims[nt][l][0], LANE) for nt in node_types)
              for l in range(n_layers)]
    n_pads = [max(_round_up(layer_dims[nt][l][1], LANE) for nt in node_types)
              for l in range(n_layers)]
    for l in range(n_layers - 1):                      # chain consistency
        m = max(n_pads[l], k_pads[l + 1])
        n_pads[l] = m
        k_pads[l + 1] = m

    stacked_w, stacked_b = [], []
    for l in range(n_layers):
        w_l, b_l = [], []
        for nt in node_types:
            w, b = raw[nt][l]
            fo, fi = w.shape
            w_l.append(jnp.pad(w.T, ((0, k_pads[l] - fi), (0, n_pads[l] - fo)))
                       .astype(jnp.bfloat16))                         # (K_pad, N_pad) bf16
            b_l.append(jnp.pad(b, (0, n_pads[l] - fo)).reshape(1, n_pads[l]))  # (1,N_pad) f32
        stacked_w.append(jnp.stack(w_l))               # (T, K_pad, N_pad)
        stacked_b.append(jnp.stack(b_l))               # (T, 1, N_pad)

    enc_params = {"node_types": node_types, "w": stacked_w, "b": stacked_b,
                  "layer_dims": layer_dims, "emb_dim": output_dim}
    return raw, enc_params


# ---------------------------------------------------------------------------
# LinkPredictionModel.forward
# ---------------------------------------------------------------------------
def link_prediction_forward(x_dict, edge_label_index_dict, enc_params,
                            *, tile_m: int = 256, tile_e: int = 512):
    # TODO(synk): the real `gnn` is an arbitrary injected hetero module (message
    # passing unspecified); it is stood in by a per-node-type fused MLP encoder.
    emb_all = encode_all_node_types(x_dict, enc_params, tile_m=tile_m)  # (T, M_pad, D_pad)
    type_idx = {nt: i for i, nt in enumerate(enc_params["node_types"])}

    edge_types, f1s, f2s = [], [], []
    for et, eidx in edge_label_index_dict.items():
        src, _, dst = et
        # Endpoint row gather on the padded embedding slab (no [:M] slice copy);
        # padded rows are never indexed.
        # TODO(synk): fuse this gather into the score kernel (scalar-prefetched edge
        # indices + in-kernel row gather) to drop the (E, D_pad) HBM temporaries —
        # biggest win on v5e's lower HBM bandwidth.
        f1s.append(emb_all[type_idx[src], eidx[0]])
        f2s.append(emb_all[type_idx[dst], eidx[1]])
        edge_types.append(et)

    scores = edge_scores_batched(f1s, f2s, tile_e=tile_e, d_real=enc_params["emb_dim"])
    return dict(zip(edge_types, scores))


def reference_forward(x_dict, edge_label_index_dict, raw_params_dict):
    emb = {}
    for nt, x in x_dict.items():
        h = x
        layers = raw_params_dict[nt]
        for i, (w, b) in enumerate(layers):
            h = h @ w.T + b
            if i < len(layers) - 1:
                h = jnp.maximum(h, 0.0)
        emb[nt] = h
    preds = {}
    for et, eidx in edge_label_index_dict.items():
        preds[et] = jnp.sum(emb[et[0]][eidx[0]] * emb[et[2]][eidx[1]], axis=-1)
    return preds


if __name__ == "__main__":
    key = jax.random.PRNGKey(0)

    # Small heterogeneous graph: two node types, two edge types.
    n_user, n_item = 40, 56
    d_user, d_item = 16, 24
    hidden, emb_dim, n_hidden_layers = 32, 32, 2

    key, ku, ki = jax.random.split(key, 3)
    x_dict = {
        "user": jax.random.normal(ku, (n_user, d_user), jnp.float32),
        "item": jax.random.normal(ki, (n_item, d_item), jnp.float32),
    }

    key, kp = jax.random.split(key)
    raw_params, enc_params = init_params(kp, {"user": d_user, "item": d_item},
                                         hidden, emb_dim, n_hidden_layers)

    # edge_label_index_dict: (src_type, relation, dst_type) -> int32 (2, E)
    key, ka, kb, kc, kd = jax.random.split(key, 5)
    e_rates, e_follows = 37, 20
    edge_label_index_dict = {
        ("user", "rates", "item"): jnp.stack([
            jax.random.randint(ka, (e_rates,), 0, n_user),
            jax.random.randint(kb, (e_rates,), 0, n_item)]).astype(jnp.int32),
        ("user", "follows", "user"): jnp.stack([
            jax.random.randint(kc, (e_follows,), 0, n_user),
            jax.random.randint(kd, (e_follows,), 0, n_user)]).astype(jnp.int32),
    }

    preds = link_prediction_forward(x_dict, edge_label_index_dict, enc_params)
    preds = jax.block_until_ready(preds)

    ref = reference_forward(x_dict, edge_label_index_dict, raw_params)
    for et, eidx in edge_label_index_dict.items():
        assert preds[et].shape == (eidx.shape[1],), et
        # bf16 MXU inputs (f32 accumulate) -> loosened tolerance vs f32 reference.
        assert jnp.allclose(preds[et], ref[et], atol=5e-2, rtol=5e-2), (
            et, float(jnp.max(jnp.abs(preds[et] - ref[et]))))

    print("KERNEL_OK")
</pallas_src>

<mosaic_0001>
module attributes {stable_mosaic.version = 11 : i64} {
  func.func @_fused_mlp_kernel(%arg0: i32, %arg1: i32, %arg2: memref<1x128x128xbf16, #tpu.memory_space<vmem>>, %arg3: memref<1x128x128xbf16, #tpu.memory_space<vmem>>, %arg4: memref<1x1x128xf32, #tpu.memory_space<vmem>>, %arg5: memref<1x128x128xbf16, #tpu.memory_space<vmem>>, %arg6: memref<1x1x128xf32, #tpu.memory_space<vmem>>, %arg7: memref<1x128x128xbf16, #tpu.memory_space<vmem>>, %arg8: memref<1x1x128xf32, #tpu.memory_space<vmem>>, %arg9: memref<1x128x128xf32, #tpu.memory_space<vmem>>) attributes {dimension_semantics = [#tpu.dimension_semantics<parallel>, #tpu.dimension_semantics<parallel>], iteration_bounds = array<i64: 2, 1>, scalar_prefetch = 0 : i64, scratch_operands = 0 : i64, tpu.core_type = #tpu.core_type<tc>, window_params = [{transform_indices = @transform_0, window_bounds = array<i64: 1, 128, 128>}, {transform_indices = @transform_1, window_bounds = array<i64: 1, 128, 128>}, {transform_indices = @transform_2, window_bounds = array<i64: 1, 1, 128>}, {transform_indices = @transform_3, window_bounds = array<i64: 1, 128, 128>}, {transform_indices = @transform_4, window_bounds = array<i64: 1, 1, 128>}, {transform_indices = @transform_5, window_bounds = array<i64: 1, 128, 128>}, {transform_indices = @transform_6, window_bounds = array<i64: 1, 1, 128>}, {transform_indices = @transform_7, window_bounds = array<i64: 1, 128, 128>}]} {
    %c0 = arith.constant 0 : index
    %c0_0 = arith.constant 0 : index
    %c0_1 = arith.constant 0 : index
    %0 = vector.load %arg2[%c0, %c0_0, %c0_1] : memref<1x128x128xbf16, #tpu.memory_space<vmem>>, vector<1x128x128xbf16>
    %1 = vector.shape_cast %0 : vector<1x128x128xbf16> to vector<128x128xbf16>
    %c0_2 = arith.constant 0 : index
    %c0_3 = arith.constant 0 : index
    %c0_4 = arith.constant 0 : index
    %2 = vector.load %arg3[%c0_2, %c0_3, %c0_4] : memref<1x128x128xbf16, #tpu.memory_space<vmem>>, vector<1x128x128xbf16>
    %3 = vector.shape_cast %2 : vector<1x128x128xbf16> to vector<128x128xbf16>
    %c0_5 = arith.constant 0 : index
    %c0_6 = arith.constant 0 : index
    %c0_7 = arith.constant 0 : index
    %4 = vector.load %arg4[%c0_5, %c0_6, %c0_7] : memref<1x1x128xf32, #tpu.memory_space<vmem>>, vector<1x1x128xf32>
    %5 = vector.shape_cast %4 : vector<1x1x128xf32> to vector<1x128xf32>
    %cst = arith.constant dense<0.000000e+00> : vector<128x128xf32>
    %6 = tpu.matmul %1, %3, %cst {dimension_numbers = #tpu.dot_dimension_numbers<[1], [0], [0], [1], [0, 0, 1, 1], [], []>} : vector<128x128xbf16>, vector<128x128xbf16>, vector<128x128xf32> -> vector<128x128xf32>
    %7 = vector.broadcast %5 : vector<1x128xf32> to vector<128x128xf32>
    %8 = arith.addf %6, %7 : vector<128x128xf32>
    %cst_8 = arith.constant 0.000000e+00 : f32
    %9 = vector.broadcast %cst_8 : f32 to vector<128x128xf32>
    %10 = arith.maximumf %8, %9 : vector<128x128xf32>
    %11 = arith.truncf %10 : vector<128x128xf32> to vector<128x128xbf16>
    %c0_9 = arith.constant 0 : index
    %c0_10 = arith.constant 0 : index
    %c0_11 = arith.constant 0 : index
    %12 = vector.load %arg5[%c0_9, %c0_10, %c0_11] : memref<1x128x128xbf16, #tpu.memory_space<vmem>>, vector<1x128x128xbf16>
    %13 = vector.shape_cast %12 : vector<1x128x128xbf16> to vector<128x128xbf16>
    %c0_12 = arith.constant 0 : index
    %c0_13 = arith.constant 0 : index
    %c0_14 = arith.constant 0 : index
    %14 = vector.load %arg6[%c0_12, %c0_13, %c0_14] : memref<1x1x128xf32, #tpu.memory_space<vmem>>, vector<1x1x128xf32>
    %15 = vector.shape_cast %14 : vector<1x1x128xf32> to vector<1x128xf32>
    %cst_15 = arith.constant dense<0.000000e+00> : vector<128x128xf32>
    %16 = tpu.matmul %11, %13, %cst_15 {dimension_numbers = #tpu.dot_dimension_numbers<[1], [0], [0], [1], [0, 0, 1, 1], [], []>} : vector<128x128xbf16>, vector<128x128xbf16>, vector<128x128xf32> -> vector<128x128xf32>
    %17 = vector.broadcast %15 : vector<1x128xf32> to vector<128x128xf32>
    %18 = arith.addf %16, %17 : vector<128x128xf32>
    %cst_16 = arith.constant 0.000000e+00 : f32
    %19 = vector.broadcast %cst_16 : f32 to vector<128x128xf32>
    %20 = arith.maximumf %18, %19 : vector<128x128xf32>
    %21 = arith.truncf %20 : vector<128x128xf32> to vector<128x128xbf16>
    %c0_17 = arith.constant 0 : index
    %c0_18 = arith.constant 0 : index
    %c0_19 = arith.constant 0 : index
    %22 = vector.load %arg7[%c0_17, %c0_18, %c0_19] : memref<1x128x128xbf16, #tpu.memory_space<vmem>>, vector<1x128x128xbf16>
    %23 = vector.shape_cast %22 : vector<1x128x128xbf16> to vector<128x128xbf16>
    %c0_20 = arith.constant 0 : index
    %c0_21 = arith.constant 0 : index
    %c0_22 = arith.constant 0 : index
    %24 = vector.load %arg8[%c0_20, %c0_21, %c0_22] : memref<1x1x128xf32, #tpu.memory_space<vmem>>, vector<1x1x128xf32>
    %25 = vector.shape_cast %24 : vector<1x1x128xf32> to vector<1x128xf32>
    %cst_23 = arith.constant dense<0.000000e+00> : vector<128x128xf32>
    %26 = tpu.matmul %21, %23, %cst_23 {dimension_numbers = #tpu.dot_dimension_numbers<[1], [0], [0], [1], [0, 0, 1, 1], [], []>} : vector<128x128xbf16>, vector<128x128xbf16>, vector<128x128xf32> -> vector<128x128xf32>
    %27 = vector.broadcast %25 : vector<1x128xf32> to vector<128x128xf32>
    %28 = arith.addf %26, %27 : vector<128x128xf32>
    %c0_24 = arith.constant 0 : index
    %c0_25 = arith.constant 0 : index
    %c0_26 = arith.constant 0 : index
    %29 = vector.load %arg9[%c0_24, %c0_25, %c0_26] : memref<1x128x128xf32, #tpu.memory_space<vmem>>, vector<1x128x128xf32>
    %30 = vector.shape_cast %29 : vector<1x128x128xf32> to vector<128x128xf32>
    %31 = vector.shape_cast %28 : vector<128x128xf32> to vector<1x128x128xf32>
    tpu.vector_store %arg9[%c0_24, %c0_25, %c0_26], %31 {strides = array<i32>} : memref<1x128x128xf32, #tpu.memory_space<vmem>>, vector<1x128x128xf32>,
    return
  }
  func.func @transform_0(%arg0: i32, %arg1: i32) -> (i32, i32, i32) {
    %c0_i32 = arith.constant 0 : i32
    %c0_i32_0 = arith.constant 0 : i32
    return %arg0, %arg1, %c0_i32 : i32, i32, i32
  }
  func.func @transform_1(%arg0: i32, %arg1: i32) -> (i32, i32, i32) {
    %c0_i32 = arith.constant 0 : i32
    %c0_i32_0 = arith.constant 0 : i32
    %c0_i32_1 = arith.constant 0 : i32
    return %arg0, %c0_i32, %c0_i32_0 : i32, i32, i32
  }
  func.func @transform_2(%arg0: i32, %arg1: i32) -> (i32, i32, i32) {
    %c0_i32 = arith.constant 0 : i32
    %c0_i32_0 = arith.constant 0 : i32
    %c0_i32_1 = arith.constant 0 : i32
    return %arg0, %c0_i32, %c0_i32_0 : i32, i32, i32
  }
  func.func @transform_3(%arg0: i32, %arg1: i32) -> (i32, i32, i32) {
    %c0_i32 = arith.constant 0 : i32
    %c0_i32_0 = arith.constant 0 : i32
    %c0_i32_1 = arith.constant 0 : i32
    return %arg0, %c0_i32, %c0_i32_0 : i32, i32, i32
  }
  func.func @transform_4(%arg0: i32, %arg1: i32) -> (i32, i32, i32) {
    %c0_i32 = arith.constant 0 : i32
    %c0_i32_0 = arith.constant 0 : i32
    %c0_i32_1 = arith.constant 0 : i32
    return %arg0, %c0_i32, %c0_i32_0 : i32, i32, i32
  }
  func.func @transform_5(%arg0: i32, %arg1: i32) -> (i32, i32, i32) {
    %c0_i32 = arith.constant 0 : i32
    %c0_i32_0 = arith.constant 0 : i32
    %c0_i32_1 = arith.constant 0 : i32
    return %arg0, %c0_i32, %c0_i32_0 : i32, i32, i32
  }
  func.func @transform_6(%arg0: i32, %arg1: i32) -> (i32, i32, i32) {
    %c0_i32 = arith.constant 0 : i32
    %c0_i32_0 = arith.constant 0 : i32
    %c0_i32_1 = arith.constant 0 : i32
    return %arg0, %c0_i32, %c0_i32_0 : i32, i32, i32
  }
  func.func @transform_7(%arg0: i32, %arg1: i32) -> (i32, i32, i32) {
    %c0_i32 = arith.constant 0 : i32
    %c0_i32_0 = arith.constant 0 : i32
    return %arg0, %arg1, %c0_i32 : i32, i32, i32
  }
}

</mosaic_0001>

<bundles_post_ra>
// kernel: tpu_custom_call.1
= control target key start
LH: loop header
LB: loop body
LE: loop exit
PB: predicated region body
PF: predicated region fallthrough
CT: control target
= control target key end

     0   :  { %s2611_s0 = inlined_call_operand.hbm [shape: bf16[2,128,128], index: 0, kind: input, shape index: {}]   ;;  %s2612_s1 = inlined_call_operand.hbm [shape: bf16[2,128,128], index: 1, kind: input, shape index: {}]   ;;  %s2613_s2 = inlined_call_operand.hbm [shape: f32[2,1,128], index: 2, kind: input, shape index: {}]   ;;  %s2614_s3 = inlined_call_operand.hbm [shape: bf16[2,128,128], index: 3, kind: input, shape index: {}]   ;;  %s2615_s4 = inlined_call_operand.hbm [shape: f32[2,1,128], index: 4, kind: input, shape index: {}]   ;;  %s2616_s5 = inlined_call_operand.hbm [shape: bf16[2,128,128], index: 5, kind: input, shape index: {}]   ;;  %s2617_s6 = inlined_call_operand.hbm [shape: f32[2,1,128], index: 6, kind: input, shape index: {}]   ;;  %s2618_s7 = inlined_call_operand.hbm [shape: f32[2,128,128], index: 7, kind: output, shape index: {}]  }
   0x1   :  { %2634 = sst [smem:[#allocation26_spill]] %s2612_s1 }
   0x2   :  { %2635 = sst [smem:[#allocation27_spill]] %s2614_s3 }
   0x3   :  { %2636 = sst [smem:[#allocation28_spill]] %s2616_s5 }
   0x4   :  { %12 = vsyncpa [#allocation3], 0 }
   0x5   :  { %14 = vsyncpa [#allocation3 + $0x1], 0 }
   0x6   :  { %15 = vsyncpa [#allocation6], 0 }
   0x7   :  { %17 = vsyncpa [#allocation6 + $0x1], 0 }
   0x8   :  { %18 = vsyncpa [#allocation9], 0 }
   0x9   :  { %20 = vsyncpa [#allocation9 + $0x1], 0 }
   0xa   :  { %21 = vsyncpa [#allocation12], 0 }
   0xb   :  { %23 = vsyncpa [#allocation12 + $0x1], 0 }
   0xc   :  { %24 = vsyncpa [#allocation4], 0 }
   0xd   :  { %26 = vsyncpa [#allocation4 + $0x1], 0  ;;  %s2102_s24 = smov 0   ;;  %s2104_s25 = smov 0  }
   0xe   :  { %s2106_s26 = smov 0   ;;  %s2108_s27 = smov 0  }
   0xf   :  { %s2110_s28 = smov 0   ;;  %s2112_s29 = smov 0  }
  0x10 LB: > { %2637 = sst [smem:[#allocation20_spill]] %s2028_s24  ;;  %s2133_s30 = sadd.s32 4294967295, %s2048_s29   ;;  %s2048_s29 = sphi %s2112_s29, %s32_s29   ;;  %s2044_s28 = sphi %s2110_s28, %s2677_s28   ;;  %s2040_s27 = sphi %s2108_s27, %s2676_s27   ;;  %s2036_s26 = sphi %s2106_s26, %s2672_s26   ;;  %s2032_s25 = sphi %s2104_s25, %s2675_s25   ;;  %s2028_s24 = sphi %s2102_s24, %s2674_s24  }
  0x11   : > { %2638 = sst [smem:[#allocation21_spill]] %s2036_s26  ;;  %s1387_s8 = sadd.s32 4294967294, %s2048_s29  }
  0x12   : > { %2639 = sst [smem:[#allocation22_spill]] %s2048_s29  ;;  %s44_s9 = sadd.s32 1, %s2044_s28 }
  0x13   : > { %s53_s10 = sadd.s32 1, %s2036_s26  ;;  %p46_p0 = scmp.ge.s32.totalorder %s44_s9, 2 }
  0x14   : > { %p60_p1 = scmp.ne.s32.totalorder %s2036_s26, %s2032_s25  ;;  %p61_p2 = scmp.eq.s32.totalorder %s2048_s29, 0 }
  0x15   : > { %p66_p3 = scmp.ne.s32.totalorder %s2032_s25, %s2028_s24  ;;  %s2679_s9 = smov (%p46_p0, %s44_s9), 0 }
  0x16   : > { %2640 = sst [smem:[#allocation23_spill]] %s2679_s9  ;;  %p2145_p4 = por %p61_p2, %p60_p1 }
  0x17   : > { %p67_p5 = scmp.eq.s32.totalorder %s2133_s30, 0  ;;  %s48_s12 = ssub.s32 %s2044_s28, %s2679_s9 }
  0x18   : > { %p248_p6 = scmp.eq.s32.totalorder %s2133_s30, 1  ;;  %p51_p7 = scmp.eq.s32.totalorder %s48_s12, 0 }
  0x19   : > { %p2153_p8 = por %p67_p5, %p66_p3  ;;  %p254_p10 = scmp.eq.s32.totalorder %s1387_s8, 1 }
  0x1a   : > { %p2157_p9 = por %p248_p6, %p60_p1  ;;  %p1658_p13 = scmp.lt.s32.totalorder %s2048_s29, 2 }
  0x1b   : > { %s2642_s13 = scalar_select %p2153_p8, 1, 0 }
  0x1c   : > { %s2643_s14 = scalar_select %p2157_p9, 1, 0 }
  0x1d   : > { %s2162_s15 = scalar_select %p51_p7, %s2036_s26, %s53_s10  }
  0x1e   : > { %p2164_p11 = por %p254_p10, %p66_p3  ;;  %s2171_s17 = sand.u32 1, %s2036_s26  }
  0x1f   : > { %2644 = sst [smem:[#allocation24_spill]] %s2162_s15  ;;  %s2174_s18 = sshll.u32 %s2171_s17, 6 }
  0x20   : > { %s2645_s16 = scalar_select %p2164_p11, 1, 0 }
  0x21   : > { %s2177_s19 = sshll.u32 %s2044_s28, 10  ;;  %p2181_p0 = pnand %p1658_p13, %p2145_p4 }
  0x22   : > { %2646 = sst [smem:[#allocation25_spill]] %s2645_s16  ;;  %s2186_s21 = sand.u32 1, %s2048_s29  }
  0x23   : > { %s2647_s20 = scalar_select %p2181_p0, 1, 0 }
  0x24   : > { %s2648_s1 = sld [smem:[#allocation26_spill]]  ;;  %s301_s10 = scalar_lea.vmem [#allocation5], %s2174_s18 }
  0x25   : > { %s308_s11 = sshll.u32 %s301_s10, 4  ;;  %p2204_p4 = pneg %p2181_p0  ;;  %s2196_s11 = int_to_ptr.vmem [resolvable:$true] %s308_s11 }
  0x2a   : > { %s2192_s8 = scalar_lea.hbm %s2648_s1, %s2177_s19  ;;  %s1749_s10 = scalar_lea.hbm %s2648_s1, 2048 }
  0x2b   : > { %s1744_s9 = scalar_lea.hbm %s2192_s8, 1024  ;;  %p1750_p7 = scmp.lt.u32.totalorder %s2192_s8, %s2648_s1 }
  0x2c   : > { %p1745_p3 = scmp.ne.s32.totalorder %s2192_s8, %s1744_s9  ;;  %p1751_p10 = scmp.lt.u32.totalorder %s1749_s10, %s1744_s9 }
  0x2d   : > { %p1753_p12 = scmp.lt.u32.totalorder %s1744_s9, %s2192_s8 }
  0x2e   : > { %p1747_p5 = pnand %p2204_p4, %p1745_p3  ;;  %p1752_p13 = por %p1751_p10, %p1750_p7 }
  0x30   : > { %p1748_p6 = pneg %p1747_p5  ;;  %p1754_p1 = por %p1753_p12, %p1752_p13 }
  0x32   : > { %p1755_p2 = pnand %p1754_p1, %p1748_p6 }
  0x34   : > { %1758 = shalt.err (!%p1755_p2)
}
  0x35   : > { %s1759_s12 = scalar_lea.vmem %s2196_s11, 1024  ;;  %s2050_s22 = smov [#allocation5]  }
  0x36   : > { %p1760_p3 = scmp.ne.s32.totalorder %s2196_s11, %s1759_s12  ;;  %s1764_s23 = sshll.u32 %s2050_s22, 4  ;;  %s1765_s23 = int_to_ptr.vmem [resolvable:$false] %s1764_s23 }
  0x37   : > { %s1766_s26 = scalar_lea.vmem %s1765_s23, 2048  ;;  %p1767_p9 = scmp.lt.s32.totalorder %s2196_s11, %s1765_s23 }
  0x38   : > { %p1762_p5 = pnand %p1760_p3, %p2204_p4  ;;  %p1768_p8 = scmp.lt.s32.totalorder %s1766_s26, %s1759_s12 }
  0x3a   : > { %p1763_p11 = pneg %p1762_p5  ;;  %p1769_p7 = por %p1768_p8, %p1767_p9 }
  0x3c   : > { %p1770_p10 = pnand %p1769_p7, %p1763_p11 }
  0x3e   : > { %1773 = shalt.err (!%p1770_p10)
}
  0x3f   : > { %s2625_s9 = smov 64   ;;  %s2627_s16 = smov 4  }
  0x40   : > { %s2650_s12 = scalar_lea.sflag [#allocation6], %s2186_s21  ;;  %p2651_p8 = scmp.lt.s32.totalorder %s2048_s29, 3 }
  0x41   : > { %1638 = dma.hbm_to_vmem [thread:$0]  (!%p2181_p0), %s2192_s8, 1024, %s2196_s11, %s2650_s12, %s2625_s9, %s2625_s9, %s2627_s16  }
  0x42   : > { %p2652_p9 = scmp.ge.s32.totalorder %s2048_s29, 1  ;;  %s2654_s3 = sld [smem:[#allocation27_spill]] }
  0x43   : > { %s339_s1 = scalar_lea.vmem [#allocation8], %s2174_s18  ;;  %s2631_s8 = scalar_lea.sflag [#allocation9], %s2186_s21 }
  0x44   : > { %p2236_p11 = pnand %p2652_p9, %p2651_p8  ;;  %s346_s24 = sshll.u32 %s339_s1, 4  ;;  %s2247_s24 = int_to_ptr.vmem [resolvable:$true] %s346_s24 }
  0x46   : > { %s2653_s10 = scalar_select %p2236_p11, 1, 0 }
  0x48   : > { %s2244_s26 = scalar_lea.hbm %s2654_s3, %s2177_s19  ;;  %s1779_s22 = scalar_lea.hbm %s2654_s3, 2048 }
  0x49   : > { %s1774_s11 = scalar_lea.hbm %s2244_s26, 1024  ;;  %p1780_p6 = scmp.lt.u32.totalorder %s2244_s26, %s2654_s3 }
  0x4a   : > { %p1775_p12 = scmp.ne.s32.totalorder %s2244_s26, %s1774_s11  ;;  %p1781_p13 = scmp.lt.u32.totalorder %s1779_s22, %s1774_s11 }
  0x4b   : > { %p1783_p5 = scmp.lt.u32.totalorder %s1774_s11, %s2244_s26 }
  0x4c   : > { %p1777_p1 = pnand %p1775_p12, %p2204_p4  ;;  %p1782_p3 = por %p1781_p13, %p1780_p6 }
  0x4e   : > { %p1778_p2 = pneg %p1777_p1  ;;  %p1784_p7 = por %p1783_p5, %p1782_p3 }
  0x50   : > { %p1785_p10 = pnand %p1784_p7, %p1778_p2 }
  0x52   : > { %1788 = shalt.err (!%p1785_p10)
}
  0x53   : > { %s1789_s1 = scalar_lea.vmem %s2247_s24, 1024  ;;  %s2053_s9 = smov [#allocation8]  }
  0x54   : > { %p1790_p8 = scmp.ne.s32.totalorder %s2247_s24, %s1789_s1  ;;  %s1794_s12 = sshll.u32 %s2053_s9, 4  ;;  %s1795_s12 = int_to_ptr.vmem [resolvable:$false] %s1794_s12 }
  0x55   : > { %s1796_s16 = scalar_lea.vmem %s1795_s12, 2048  ;;  %p1797_p1 = scmp.lt.s32.totalorder %s2247_s24, %s1795_s12 }
  0x56   : > { %p1792_p9 = pnand %p1790_p8, %p2204_p4  ;;  %p1798_p11 = scmp.lt.s32.totalorder %s1796_s16, %s1789_s1 }
  0x58   : > { %p1793_p12 = pneg %p1792_p9  ;;  %p1799_p6 = por %p1798_p11, %p1797_p1 }
  0x5a   : > { %p1800_p13 = pnand %p1799_p6, %p1793_p12 }
  0x5c   : > { %1803 = shalt.err (!%p1800_p13)
}
  0x5d   : > { %s2655_s11 = smov 4   ;;  %s2656_s22 = smov 64  }
  0x5e   : > { %1644 = dma.hbm_to_vmem [thread:$0]  (!%p2181_p0), %s2244_s26, 1024, %s2247_s24, %s2631_s8, %s2656_s22, %s2656_s22, %s2655_s11  }
  0x5f   : > { %s2657_s5 = sld [smem:[#allocation28_spill]]  ;;  %s377_s12 = scalar_lea.vmem [#allocation11], %s2174_s18 }
  0x60   : > { %s384_s16 = sshll.u32 %s377_s12, 4  ;;  %s374_s3 = scalar_lea.sflag [#allocation12], %s2186_s21  ;;  %s2283_s16 = int_to_ptr.vmem [resolvable:$true] %s384_s16 }
  0x65   : > { %s2280_s1 = scalar_lea.hbm %s2657_s5, %s2177_s19  ;;  %s1809_s23 = scalar_lea.hbm %s2657_s5, 2048 }
  0x66   : > { %s1804_s29 = scalar_lea.hbm %s2280_s1, 1024  ;;  %p1810_p5 = scmp.lt.u32.totalorder %s2280_s1, %s2657_s5 }
  0x67   : > { %p1805_p11 = scmp.ne.s32.totalorder %s2280_s1, %s1804_s29  ;;  %p1811_p7 = scmp.lt.u32.totalorder %s1809_s23, %s1804_s29 }
  0x68   : > { %p1813_p8 = scmp.lt.u32.totalorder %s1804_s29, %s2280_s1 }
  0x69   : > { %p1807_p2 = pnand %p1805_p11, %p2204_p4  ;;  %p1812_p10 = por %p1811_p7, %p1810_p5 }
  0x6b   : > { %p1808_p3 = pneg %p1807_p2  ;;  %p1814_p9 = por %p1813_p8, %p1812_p10 }
  0x6d   : > { %p1815_p12 = pnand %p1814_p9, %p1808_p3 }
  0x6f   : > { %1818 = shalt.err (!%p1815_p12)
}
  0x70   : > { %s1819_s12 = scalar_lea.vmem %s2283_s16, 1024  ;;  %s2054_s24 = smov [#allocation11]  }
  0x71   : > { %p1820_p1 = scmp.ne.s32.totalorder %s2283_s16, %s1819_s12  ;;  %s1824_s26 = sshll.u32 %s2054_s24, 4  ;;  %s1825_s26 = int_to_ptr.vmem [resolvable:$false] %s1824_s26 }
  0x72   : > { %s1826_s8 = scalar_lea.vmem %s1825_s26, 2048  ;;  %p1827_p11 = scmp.lt.s32.totalorder %s2283_s16, %s1825_s26 }
  0x73   : > { %p1822_p6 = pnand %p1820_p1, %p2204_p4  ;;  %p1828_p2 = scmp.lt.s32.totalorder %s1826_s8, %s1819_s12 }
  0x75   : > { %p1823_p13 = pneg %p1822_p6  ;;  %p1829_p5 = por %p1828_p2, %p1827_p11 }
  0x77   : > { %p1830_p7 = pnand %p1829_p5, %p1823_p13 }
  0x79   : > { %1833 = shalt.err (!%p1830_p7)
}
  0x7a   : > { %1650 = dma.hbm_to_vmem [thread:$0]  (!%p2181_p0), %s2280_s1, 1024, %s2283_s16, %s374_s3, %s2656_s22, %s2656_s22, %s2655_s11  }
  0x7b   : > { %s2316_s9 = scalar_lea.hbm %s2611_s0, %s2177_s19  ;;  %s278_s12 = scalar_lea.vmem [#allocation2], %s2174_s18 }
  0x7c   : > { %s287_s24 = sshll.u32 %s278_s12, 4  ;;  %s2322_s26 = sshll.u32 %s2044_s28, 4  ;;  %s2319_s24 = int_to_ptr.vmem [resolvable:$true] %s287_s24 }
  0x7d   : > { %s275_s8 = scalar_lea.sflag [#allocation3], %s2171_s17  ;;  %s1834_s5 = scalar_lea.hbm %s2316_s9, 1024 }
  0x7e   : > { %p1835_p3 = scmp.ne.s32.totalorder %s2316_s9, %s1834_s5  ;;  %s1839_s19 = scalar_lea.hbm %s2611_s0, 2048 }
  0x7f   : > { %p1840_p9 = scmp.lt.u32.totalorder %s2316_s9, %s2611_s0  ;;  %p1841_p12 = scmp.lt.u32.totalorder %s1839_s19, %s1834_s5 }
  0x80   : > { %p1837_p10 = pnand %p1835_p3, %p2204_p4  ;;  %p1843_p6 = scmp.lt.u32.totalorder %s1834_s5, %s2316_s9 }
  0x81   : > { %p1842_p1 = por %p1841_p12, %p1840_p9 }
  0x82   : > { %p1838_p8 = pneg %p1837_p10 }
  0x83   : > { %p1844_p13 = por %p1843_p6, %p1842_p1 }
  0x85   : > { %p1845_p11 = pnand %p1844_p13, %p1838_p8 }
  0x87   : > { %1848 = shalt.err (!%p1845_p11)
}
  0x88   : > { %s1849_s18 = scalar_lea.vmem %s2319_s24, 1024  ;;  %s2055_s12 = smov [#allocation2]  }
  0x89   : > { %p1850_p2 = scmp.ne.s32.totalorder %s2319_s24, %s1849_s18  ;;  %s1854_s1 = sshll.u32 %s2055_s12, 4  ;;  %s1855_s1 = int_to_ptr.vmem [resolvable:$false] %s1854_s1 }
  0x8a   : > { %s1856_s16 = scalar_lea.vmem %s1855_s1, 2048  ;;  %p1857_p3 = scmp.lt.s32.totalorder %s2319_s24, %s1855_s1 }
  0x8b   : > { %p1852_p5 = pnand %p1850_p2, %p2204_p4  ;;  %p1858_p10 = scmp.lt.s32.totalorder %s1856_s16, %s1849_s18 }
  0x8d   : > { %p1853_p7 = pneg %p1852_p5  ;;  %p1859_p9 = por %p1858_p10, %p1857_p3 }
  0x8f   : > { %p1860_p12 = pnand %p1859_p9, %p1853_p7 }
  0x91   : > { %1863 = shalt.err (!%p1860_p12)
}
  0x92   : > { %1635 = dma.hbm_to_vmem [thread:$0]  (!%p2181_p0), %s2316_s9, 1024, %s2319_s24, %s275_s8, %s2656_s22, %s2656_s22, %s2655_s11  }
  0x93   : > { %s2355_s29 = scalar_lea.hbm %s2613_s2, %s2322_s26  ;;  %s321_s23 = scalar_lea.vmem [#allocation7], %s2171_s17 }
  0x94   : > { %s328_s18 = sshll.u32 %s321_s23, 4  ;;  %s1864_s12 = scalar_lea.hbm %s2355_s29, 16  ;;  %s329_s18 = int_to_ptr.vmem [resolvable:$true] %s328_s18 }
  0x95   : > { %p1865_p8 = scmp.ne.s32.totalorder %s2355_s29, %s1864_s12  ;;  %s1869_s11 = scalar_lea.hbm %s2613_s2, 32 }
  0x96   : > { %p1870_p13 = scmp.lt.u32.totalorder %s2355_s29, %s2613_s2  ;;  %p1871_p11 = scmp.lt.u32.totalorder %s1869_s11, %s1864_s12 }
  0x97   : > { %p1867_p1 = pnand %p1865_p8, %p2204_p4  ;;  %p1873_p5 = scmp.lt.u32.totalorder %s1864_s12, %s2355_s29 }
  0x98   : > { %p1872_p2 = por %p1871_p11, %p1870_p13 }
  0x99   : > { %p1868_p6 = pneg %p1867_p1 }
  0x9a   : > { %p1874_p7 = por %p1873_p5, %p1872_p2 }
  0x9c   : > { %p1875_p3 = pnand %p1874_p7, %p1868_p6 }
  0x9e   : > { %1878 = shalt.err (!%p1875_p3)
}
  0x9f   : > { %s1879_s24 = scalar_lea.vmem %s329_s18, 16  ;;  %s2056_s8 = smov [#allocation7]  }
  0xa0   : > { %p1880_p10 = scmp.ne.s32.totalorder %s329_s18, %s1879_s24  ;;  %s1884_s5 = sshll.u32 %s2056_s8, 4  ;;  %s1885_s5 = int_to_ptr.vmem [resolvable:$false] %s1884_s5 }
  0xa1   : > { %s1886_s19 = scalar_lea.vmem %s1885_s5, 32  ;;  %p1887_p8 = scmp.lt.s32.totalorder %s329_s18, %s1885_s5 }
  0xa2   : > { %p1882_p9 = pnand %p1880_p10, %p2204_p4  ;;  %p1888_p1 = scmp.lt.s32.totalorder %s1886_s19, %s1879_s24 }
  0xa4   : > { %p1883_p12 = pneg %p1882_p9  ;;  %p1889_p0 = por %p1888_p1, %p1887_p8 }
  0xa6   : > { %p1890_p11 = pnand %p1889_p0, %p1883_p12 }
  0xa8   : > { %1893 = shalt.err (!%p1890_p11)
}
  0xa9   : > { %p2658_p13 = scmp.ne.s32.totalorder %s2647_s20, 0  ;;  %s2659_s23 = scalar_lea.sflag [#allocation6], %s2186_s21 }
  0xaa   : > { %s2381_s16 = scalar_lea.hbm %s2615_s4, %s2322_s26  ;;  %s359_s11 = scalar_lea.vmem [#allocation10], %s2171_s17 }
  0xab   : > { %1641 = dma.hbm_to_vmem [thread:$0]  (!%p2658_p13), %s2355_s29, 16, %s329_s18, %s2659_s23  }
  0xac   : > { %s366_s22 = sshll.u32 %s359_s11, 4  ;;  %s1894_s9 = scalar_lea.hbm %s2381_s16, 16  ;;  %s367_s22 = int_to_ptr.vmem [resolvable:$true] %s366_s22 }
  0xad   : > { %p1895_p0 = scmp.ne.s32.totalorder %s2381_s16, %s1894_s9  ;;  %s1899_s29 = scalar_lea.hbm %s2615_s4, 32 }
  0xae   : > { %p1900_p5 = scmp.lt.u32.totalorder %s2381_s16, %s2615_s4  ;;  %p1901_p7 = scmp.lt.u32.totalorder %s1899_s29, %s1894_s9 }
  0xaf   : > { %p1897_p6 = pnand %p1895_p0, %p2204_p4  ;;  %p1903_p10 = scmp.lt.u32.totalorder %s1894_s9, %s2381_s16 }
  0xb0   : > { %p1902_p3 = por %p1901_p7, %p1900_p5 }
  0xb1   : > { %p1898_p2 = pneg %p1897_p6 }
  0xb2   : > { %p1904_p9 = por %p1903_p10, %p1902_p3 }
  0xb4   : > { %p1905_p12 = pnand %p1904_p9, %p1898_p2 }
  0xb6   : > { %1908 = shalt.err (!%p1905_p12)
}
  0xb7   : > { %s1909_s19 = scalar_lea.vmem %s367_s22, 16  ;;  %s2057_s23 = smov [#allocation10]  }
  0xb8   : > { %p1910_p8 = scmp.ne.s32.totalorder %s367_s22, %s1909_s19  ;;  %s1914_s12 = sshll.u32 %s2057_s23, 4  ;;  %s1915_s12 = int_to_ptr.vmem [resolvable:$false] %s1914_s12 }
  0xb9   : > { %s1916_s1 = scalar_lea.vmem %s1915_s12, 32  ;;  %p1917_p0 = scmp.lt.s32.totalorder %s367_s22, %s1915_s12 }
  0xba   : > { %p1912_p1 = pnand %p1910_p8, %p2204_p4  ;;  %p1918_p6 = scmp.lt.s32.totalorder %s1916_s1, %s1909_s19 }
  0xbc   : > { %p1913_p11 = pneg %p1912_p1  ;;  %p1919_p13 = por %p1918_p6, %p1917_p0 }
  0xbe   : > { %p1920_p5 = pnand %p1919_p13, %p1913_p11 }
  0xc0   : > { %1923 = shalt.err (!%p1920_p5)
}
  0xc1   : > { %p2660_p7 = scmp.ne.s32.totalorder %s2647_s20, 0  ;;  %s2661_s11 = scalar_lea.sflag [#allocation9], %s2186_s21 }
  0xc2   : > { %s2407_s8 = scalar_lea.hbm %s2617_s6, %s2322_s26  ;;  %s397_s29 = scalar_lea.vmem [#allocation13], %s2171_s17 }
  0xc3   : > { %1647 = dma.hbm_to_vmem [thread:$0]  (!%p2660_p7), %s2381_s16, 16, %s367_s22, %s2661_s11  }
  0xc4   : > { %s404_s18 = sshll.u32 %s397_s29, 4  ;;  %s1924_s5 = scalar_lea.hbm %s2407_s8, 16  ;;  %s405_s18 = int_to_ptr.vmem [resolvable:$true] %s404_s18 }
  0xc5   : > { %p1925_p13 = scmp.ne.s32.totalorder %s2407_s8, %s1924_s5  ;;  %s1929_s16 = scalar_lea.hbm %s2617_s6, 32 }
  0xc6   : > { %p1930_p10 = scmp.lt.u32.totalorder %s2407_s8, %s2617_s6  ;;  %p1931_p9 = scmp.lt.u32.totalorder %s1929_s16, %s1924_s5 }
  0xc7   : > { %p1927_p2 = pnand %p1925_p13, %p2204_p4  ;;  %p1933_p8 = scmp.lt.u32.totalorder %s1924_s5, %s2407_s8 }
  0xc8   : > { %p1932_p12 = por %p1931_p9, %p1930_p10 }
  0xc9   : > { %p1928_p3 = pneg %p1927_p2 }
  0xca   : > { %p1934_p1 = por %p1933_p8, %p1932_p12 }
  0xcc   : > { %p1935_p11 = pnand %p1934_p1, %p1928_p3 }
  0xce   : > { %1938 = shalt.err (!%p1935_p11)
}
  0xcf   : > { %s1939_s17 = scalar_lea.vmem %s405_s18, 16  ;;  %s2058_s26 = smov [#allocation13]  }
  0xd0   : > { %p1940_p0 = scmp.ne.s32.totalorder %s405_s18, %s1939_s17  ;;  %s1944_s1 = sshll.u32 %s2058_s26, 4  ;;  %s1945_s1 = int_to_ptr.vmem [resolvable:$false] %s1944_s1 }
  0xd1   : > { %s1946_s11 = scalar_lea.vmem %s1945_s1, 32  ;;  %p1947_p13 = scmp.lt.s32.totalorder %s405_s18, %s1945_s1 }
  0xd2   : > { %p1942_p6 = pnand %p1940_p0, %p2204_p4  ;;  %p1948_p2 = scmp.lt.s32.totalorder %s1946_s11, %s1939_s17 }
  0xd4   : > { %p1943_p5 = pneg %p1942_p6  ;;  %p1949_p7 = por %p1948_p2, %p1947_p13 }
  0xd6   : > { %p1950_p9 = pnand %p1949_p7, %p1943_p5 }
  0xd8   : > { %1953 = shalt.err (!%p1950_p9)
}
  0xd9   : > { %p2662_p10 = scmp.ne.s32.totalorder %s2647_s20, 0  ;;  %p2663_p3 = scmp.ne.s32.totalorder %s2653_s10, 0 }
  0xda   : > { %s2432_s15 = sand.u32 (!%p2663_p3), 1, %s2032_s25   ;;  %p2664_p4 = scmp.ne.s32.totalorder (!%p2663_p3), %s2642_s13, 0 }
  0xdb   : > { %1653 = dma.hbm_to_vmem [thread:$0]  (!%p2662_p10), %s2407_s8, 16, %s405_s18, %s374_s3  }
  0xdc   : > { %413 = sbr.rel (%p2663_p3) target bundleno = 970 (0x3ca), region = 48  ;;  %s1406_s9 = sshll.u32 (!%p2663_p3), %s2432_s15, 6 }
  0xdd   : > { %s416_s24 = scalar_lea.sflag (!%p2663_p3), [#allocation3], %s2432_s15  ;;  %s2436_s29 = scalar_lea.vmem (!%p2663_p3), [#allocation2], %s1406_s9 }
  0xe3   : > { %2007 = dma.done.wait (%p2664_p4), %s416_s24, 1024  }
  0xe4   : > { %2009 = vsyncadd (%p2664_p4), %s416_s24, 4294966272  ;;  %s424_s3 = sand.u32 1, %s2133_s30   ;;  %s2443_s21 = scalar_lea.vmem [#allocation5], %s1406_s9 }
  0xe5   : > { %s425_s20 = scalar_lea.sflag [#allocation6], %s424_s3 }
  0xe6   : > { %2011 = dma.done.wait (%p2664_p4), %s425_s20, 1040  }
  0xe7   : > { %2013 = vsyncadd (%p2664_p4), %s425_s20, 4294966256  ;;  %s436_s10 = scalar_lea.vmem [#allocation7], %s2432_s15  ;;  %s442_s8 = scalar_lea.sflag [#allocation9], %s424_s3 }
  0xe8   : > { %s2450_s18 = scalar_lea.vmem [#allocation8], %s1406_s9 }
  0xe9   : > { %2015 = dma.done.wait (%p2664_p4), %s442_s8, 1040  }
  0xea   : > { %2017 = vsyncadd (%p2664_p4), %s442_s8, 4294966256  ;;  %s453_s30 = scalar_lea.vmem [#allocation10], %s2432_s15  ;;  %s459_s5 = scalar_lea.sflag [#allocation12], %s424_s3 }
  0xeb   : > { %s2457_s19 = scalar_lea.vmem [#allocation11], %s1406_s9 }
  0xec   : > { %2019 = dma.done.wait (%p2664_p4), %s459_s5, 1040  }
  0xed   : > { %2021 = vsyncadd (%p2664_p4), %s459_s5, 4294966256  ;;  %v1712_v0 = vld [vmem:[%s2443_s21] sm:$0xff]   ;;  %v1713_v1 = vld [vmem:[%s2443_s21 + $0x8] sm:$0xff]   ;;  %s1410_s13 = sshll.u32 %s2432_s15, 7  ;;  %s470_s23 = scalar_lea.vmem [#allocation13], %s2432_s15 }
  0xee   : > { %1504 = vmatprep.subr.bf16.mxu0 %v1712_v0  ;;  %v1714_v2 = vld [vmem:[%s2443_s21 + $0x10] sm:$0xff]   ;;  %v1715_v3 = vld [vmem:[%s2443_s21 + $0x18] sm:$0xff]   ;;  %v1720_v4 = vld [vmem:[%s2436_s29] sm:$0xff]   ;;  %s2537_s16 = scalar_lea.vmem [#allocation14], %s1410_s13  ;;  %s1455_s22 = sshll.u32 %s2040_s27, 11 }
  0xef   : > { %1505 = vmatpush3.bf16.msra.mxu0 %v1712_v0  ;;  %1520 = vmatprep.mubr.bf16.mxu0 %v1720_v4  ;;  %v1716_v5 = vld [vmem:[%s2443_s21 + $0x20] sm:$0xff]   ;;  %v1717_v6 = vld [vmem:[%s2443_s21 + $0x28] sm:$0xff]   ;;  %v1718_v9 = vld [vmem:[%s2443_s21 + $0x30] sm:$0xff]   ;;  %s1179_s12 = sshll.u32 %s2537_s16, 4  ;;  %s2557_s1 = scalar_lea.hbm %s2618_s7, %s1455_s22  ;;  %s2559_s12 = int_to_ptr.vmem [resolvable:$true] %s1179_s12 }
  0xf0   : > { %1506 = vmatprep.subr.bf16.mxu0 %v1713_v1  ;;  %v1728_v7 = vld [vmem:[%s2450_s18] sm:$0xff]   ;;  %v1729_v8 = vld [vmem:[%s2450_s18 + $0x8] sm:$0xff]   ;;  %v1730_v10 = vld [vmem:[%s2450_s18 + $0x10] sm:$0xff]   ;;  %s1164_s27 = scalar_lea.sflag [#allocation4], %s2432_s15  ;;  %s1954_s11 = scalar_lea.vmem %s2559_s12, 2048 }
  0xf1   : > { %1536 = vmatprep.subr.bf16.mxu1 %v1728_v7  ;;  %v1719_v11 = vld [vmem:[%s2443_s21 + $0x38] sm:$0xff]   ;;  %v1732_v13 = vld [vmem:[%s2450_s18 + $0x20] sm:$0xff]   ;;  %v1722_v15 = vld [vmem:[%s2436_s29 + $0x10] sm:$0xff]   ;;  %p1955_p7 = scmp.ne.s32.totalorder %s2559_s12, %s1954_s11  ;;  %p2665_p12 = scmp.ne.s32.totalorder %s2643_s14, 0 }
  0xf2   : > { %1537 = vmatpush3.bf16.msra.mxu1 %v1728_v7  ;;  %v1731_v12 = vld [vmem:[%s2450_s18 + $0x18] sm:$0xff]   ;;  %v1721_v14 = vld [vmem:[%s2436_s29 + $0x8] sm:$0xff]   ;;  %v1726_v20 = vld [vmem:[%s2436_s29 + $0x30] sm:$0xff]   ;;  %s2059_s9 = smov [#allocation14]  }
  0xf3   : > { %1507 = vmatpush3.bf16.msra.mxu0 %v1713_v1  ;;  %1538 = vmatprep.subr.bf16.mxu1 %v1729_v8  ;;  %v1733_v16 = vld [vmem:[%s2450_s18 + $0x28] sm:$0xff]   ;;  %v1723_v17 = vld [vmem:[%s2436_s29 + $0x18] sm:$0xff]   ;;  %v1724_v18 = vld [vmem:[%s2436_s29 + $0x20] sm:$0xff]   ;;  %p1956_p8 = pnand %p1955_p7, %p2665_p12  ;;  %s1958_s24 = sshll.u32 %s2059_s9, 4  ;;  %s1959_s24 = int_to_ptr.vmem [resolvable:$false] %s1958_s24 }
  0xf4   : > { %1508 = vmatprep.subr.bf16.mxu0 %v1714_v2  ;;  %v1725_v19 = vld [vmem:[%s2436_s29 + $0x28] sm:$0xff]   ;;  %v1727_v21 = vld [vmem:[%s2436_s29 + $0x38] sm:$0xff]   ;;  %v2507_v30 = vld [vmem:[%s436_s10] ss:$0 sm:$0xff]  ;;  %s1960_s29 = scalar_lea.vmem %s1959_s24, 4096  ;;  %p1961_p11 = scmp.lt.s32.totalorder %s2559_s12, %s1959_s24 }
  0xf5   : > { %v1734_v22 = vld [vmem:[%s2450_s18 + $0x30] sm:$0xff]   ;;  %v1735_v23 = vld [vmem:[%s2450_s18 + $0x38] sm:$0xff]   ;;  %v1736_v24 = vld [vmem:[%s2457_s19] sm:$0xff]   ;;  %p1957_p1 = pneg %p1956_p8  ;;  %p1962_p0 = scmp.lt.s32.totalorder %s1960_s29, %s1954_s11 }
  0xf6   : > { %1539 = vmatpush3.bf16.msra.mxu1 %v1729_v8  ;;  %v1737_v25 = vld [vmem:[%s2457_s19 + $0x8] sm:$0xff]   ;;  %v1738_v26 = vld [vmem:[%s2457_s19 + $0x10] sm:$0xff]   ;;  %v2491_v27 = vld [vmem:[%s2457_s19 + $0x18] sm:$0xff]  }
  0xf7   : > { %1509 = vmatpush3.bf16.msra.mxu0 %v1714_v2  ;;  %1540 = vmatprep.subr.bf16.mxu1 %v1730_v10  ;;  %v2495_v28 = vld [vmem:[%s2457_s19 + $0x20] sm:$0xff]   ;;  %v2500_v29 = vld [vmem:[%s2457_s19 + $0x28] sm:$0xff]   ;;  %p1963_p6 = por %p1962_p0, %p1961_p11 }
  0xf8   : > { %1510 = vmatprep.subr.bf16.mxu0 %v1715_v3 }
  0xf9   : > { %p1964_p5 = pnand %p1963_p6, %p1957_p1 }
  0xfa   : > { %1541 = vmatpush3.bf16.msra.mxu1 %v1730_v10 }
  0xfb   : > { %1511 = vmatpush3.bf16.msra.mxu0 %v1715_v3  ;;  %1542 = vmatprep.subr.bf16.mxu1 %v1731_v12 }
  0xfc   : > { %1512 = vmatprep.subr.bf16.mxu0 %v1716_v5 }
  0xfe   : > { %1543 = vmatpush3.bf16.msra.mxu1 %v1731_v12 }
  0xff   : > { %1513 = vmatpush3.bf16.msra.mxu0 %v1716_v5  ;;  %1544 = vmatprep.subr.bf16.mxu1 %v1732_v13 }
 0x100   : > { %1514 = vmatprep.subr.bf16.mxu0 %v1717_v6 }
 0x102   : > { %1545 = vmatpush3.bf16.msra.mxu1 %v1732_v13 }
 0x103   : > { %1515 = vmatpush3.bf16.msra.mxu0 %v1717_v6  ;;  %1546 = vmatprep.subr.bf16.mxu1 %v1733_v16 }
 0x104   : > { %1516 = vmatprep.subr.bf16.mxu0 %v1718_v9 }
 0x106   : > { %1547 = vmatpush3.bf16.msra.mxu1 %v1733_v16 }
 0x107   : > { %1517 = vmatpush3.bf16.msra.mxu0 %v1718_v9  ;;  %1548 = vmatprep.subr.bf16.mxu1 %v1734_v22 }
 0x108   : > { %1518 = vmatprep.subr.bf16.mxu0 %v1719_v11 }
 0x10a   : > { %1549 = vmatpush3.bf16.msra.mxu1 %v1734_v22 }
 0x10b   : > { %1519 = vmatpush3.bf16.msra.mxu0 %v1719_v11  ;;  %1550 = vmatprep.subr.bf16.mxu1 %v1735_v23 }
 0x10c   : > { %1568 = vmatprep.subr.bf16.mxu0 %v1736_v24 }
 0x10e   : > { %1521 = vmatmul.mubr.bf16.vlgmr.msra.gmra.mrb[0].mxu0 %v1721_v14  ;;  %1551 = vmatpush3.bf16.msra.mxu1 %v1735_v23  ;;  %v1742_v23 = vld [vmem:[%s2457_s19 + $0x30] sm:$0xff]  }
 0x10f   : > { %1524 = vmatprep.mubr.bf16.mxu0 %v1722_v15  ;;  %1600 = vmatprep.subr.bf16.mxu1 %v1736_v24 }
 0x110   : > { %1569 = vmatpush3.bf16.msra.mxu0 %v1736_v24 }
 0x111   : > { %1570 = vmatprep.subr.bf16.mxu0 %v1737_v25 }
 0x114   : > { %1571 = vmatpush3.bf16.msra.mxu0 %v1737_v25 }
 0x115   : > { %1572 = vmatprep.subr.bf16.mxu0 %v1738_v26 }
 0x116   : > { %1525 = vmatmul.mubr.bf16.gmra.mrb[4].mxu0 %v1723_v17 }
 0x117   : > { %1528 = vmatprep.mubr.bf16.mxu0 %v1724_v18 }
 0x118   : > { %1573 = vmatpush3.bf16.msra.mxu0 %v1738_v26 }
 0x119   : > { %1574 = vmatprep.subr.bf16.mxu0 %v2491_v27 }
 0x11c   : > { %1575 = vmatpush3.bf16.msra.mxu0 %v2491_v27 }
 0x11d   : > { %1576 = vmatprep.subr.bf16.mxu0 %v2495_v28 }
 0x11e   : > { %1529 = vmatmul.mubr.bf16.gmra.mrb[8].mxu0 %v1725_v19 }
 0x11f   : > { %1532 = vmatprep.mubr.bf16.mxu0 %v1726_v20 }
 0x120   : > { %1577 = vmatpush3.bf16.msra.mxu0 %v2495_v28 }
 0x121   : > { %1578 = vmatprep.subr.bf16.mxu0 %v2500_v29 }
 0x124   : > { %1579 = vmatpush3.bf16.msra.mxu0 %v2500_v29 }
 0x125   : > { %1580 = vmatprep.subr.bf16.mxu0 %v1742_v23 }
 0x126   : > { %1533 = vmatmul.mubr.bf16.gmra.mrb[12].mxu0 %v1727_v21 }
 0x128   : > { %1581 = vmatpush3.bf16.msra.mxu0 %v1742_v23 }
 0x1e1   : > { %v1522_v31 = vpop.f32.mrb[0].mxu0 }
 0x1e2   : > { %v709_v32 = vadd.f32 %v1522_v31, %v2507_v30  ;;  %v700_v33 = vpop.f32.mrb[1].mxu0 }
 0x1e3   : > { %v701_v34 = vadd.f32 %v2507_v30, %v700_v33  ;;  %v1523_v35 = vpop.f32.mrb[2].mxu0 }
 0x1e4   : > { %v712_v36 = vadd.f32 %v1523_v35, %v2507_v30  ;;  %v703_v37 = vpop.f32.mrb[3].mxu0  ;;  %v765_v39 = vmax.f32 %v709_v32, 0.0 }
 0x1e5   : > { %v704_v38 = vadd.f32 %v2507_v30, %v703_v37  ;;  %v763_v41 = vmax.f32 %v701_v34, 0.0 }
 0x1e6   : > { %v766_v40 = vmax.f32 %v712_v36, 0.0 }
 0x1e7   : > { %v764_v42 = vmax.f32 %v704_v38, 0.0 }
 0x1e8   : > { %v780_v43 = vpack.c.bf16 %v766_v40, %v765_v39 }
 0x1e9   : > { %v1526_v44 = vpop.f32.mrb[4].mxu0  ;;  %v779_v45 = vpack.c.bf16 %v764_v42, %v763_v41 }
 0x1ea   : > { %v725_v46 = vadd.f32 %v1526_v44, %v2507_v30  ;;  %v716_v47 = vpop.f32.mrb[5].mxu0 }
 0x1eb   : > { %v717_v48 = vadd.f32 %v2507_v30, %v716_v47  ;;  %v1527_v49 = vpop.f32.mrb[6].mxu0  ;;  %1552 = vmatprep.mubr.bf16.mxu1 %v779_v45 }
 0x1ec   : > { %v728_v50 = vadd.f32 %v1527_v49, %v2507_v30  ;;  %v719_v51 = vpop.f32.mrb[7].mxu0  ;;  %1553 = vmatmul.mubr.bf16.vlgmr.msra.gmra.mrb[0].mxu1 %v780_v43  ;;  %v769_v53 = vmax.f32 %v725_v46, 0.0 }
 0x1ed   : > { %v720_v52 = vadd.f32 %v2507_v30, %v719_v51  ;;  %1608 = vmatpush3.bf16.msra.mxu1 %v1736_v24  ;;  %v767_v55 = vmax.f32 %v717_v48, 0.0  ;;  %v1743_v24 = vld [vmem:[%s2457_s19 + $0x38] sm:$0xff]  }
 0x1ee   : > { %v770_v54 = vmax.f32 %v728_v50, 0.0  ;;  %1601 = vmatprep.subr.bf16.mxu1 %v1737_v25  ;;  %1582 = vmatprep.subr.bf16.mxu0 %v1743_v24 }
 0x1ef   : > { %v768_v56 = vmax.f32 %v720_v52, 0.0  ;;  %1583 = vmatpush3.bf16.msra.mxu0 %v1743_v24 }
 0x1f0   : > { %v782_v57 = vpack.c.bf16 %v770_v54, %v769_v53 }
 0x1f1   : > { %v781_v58 = vpack.c.bf16 %v768_v56, %v767_v55  ;;  %v1530_v59 = vpop.f32.mrb[8].mxu0  ;;  %1609 = vmatpush3.bf16.msra.mxu1 %v1737_v25  ;;  %v1428_v25 = vld [vmem:[%s453_s30] ss:$0 sm:$0xff] }
 0x1f2   : > { %v741_v60 = vadd.f32 %v1530_v59, %v2507_v30  ;;  %v732_v61 = vpop.f32.mrb[9].mxu0  ;;  %1602 = vmatprep.subr.bf16.mxu1 %v1738_v26 }
 0x1f3   : > { %v733_v62 = vadd.f32 %v2507_v30, %v732_v61  ;;  %v1531_v63 = vpop.f32.mrb[10].mxu0  ;;  %1556 = vmatprep.mubr.bf16.mxu1 %v781_v58 }
 0x1f4   : > { %v744_v0 = vadd.f32 %v1531_v63, %v2507_v30  ;;  %v735_v1 = vpop.f32.mrb[11].mxu0  ;;  %1557 = vmatmul.mubr.bf16.gmra.mrb[4].mxu1 %v782_v57  ;;  %v773_v3 = vmax.f32 %v741_v60, 0.0 }
 0x1f5   : > { %v736_v2 = vadd.f32 %v2507_v30, %v735_v1  ;;  %1610 = vmatpush3.bf16.msra.mxu1 %v1738_v26  ;;  %v771_v5 = vmax.f32 %v733_v62, 0.0 }
 0x1f6   : > { %v774_v4 = vmax.f32 %v744_v0, 0.0  ;;  %1603 = vmatprep.subr.bf16.mxu1 %v2491_v27 }
 0x1f7   : > { %v772_v6 = vmax.f32 %v736_v2, 0.0 }
 0x1f8   : > { %v784_v7 = vpack.c.bf16 %v774_v4, %v773_v3 }
 0x1f9   : > { %v783_v8 = vpack.c.bf16 %v772_v6, %v771_v5  ;;  %v1534_v9 = vpop.f32.mrb[12].mxu0  ;;  %1611 = vmatpush3.bf16.msra.mxu1 %v2491_v27 }
 0x1fa   : > { %v757_v10 = vadd.f32 %v1534_v9, %v2507_v30  ;;  %v748_v11 = vpop.f32.mrb[13].mxu0  ;;  %1604 = vmatprep.subr.bf16.mxu1 %v2495_v28 }
 0x1fb   : > { %v749_v12 = vadd.f32 %v2507_v30, %v748_v11  ;;  %v1535_v13 = vpop.f32.mrb[14].mxu0  ;;  %1560 = vmatprep.mubr.bf16.mxu1 %v783_v8 }
 0x1fc   : > { %v760_v14 = vadd.f32 %v1535_v13, %v2507_v30  ;;  %v751_v15 = vpop.f32.mrb[15].mxu0  ;;  %1561 = vmatmul.mubr.bf16.gmra.mrb[8].mxu1 %v784_v7  ;;  %v777_v17 = vmax.f32 %v757_v10, 0.0 }
 0x1fd   : > { %v752_v16 = vadd.f32 %v2507_v30, %v751_v15  ;;  %1612 = vmatpush3.bf16.msra.mxu1 %v2495_v28  ;;  %v775_v19 = vmax.f32 %v749_v12, 0.0 }
 0x1fe   : > { %v778_v18 = vmax.f32 %v760_v14, 0.0  ;;  %1605 = vmatprep.subr.bf16.mxu1 %v2500_v29 }
 0x1ff   : > { %v776_v20 = vmax.f32 %v752_v16, 0.0 }
 0x200   : > { %v786_v21 = vpack.c.bf16 %v778_v18, %v777_v17  ;;  %v1437_v18 = vld [vmem:[%s470_s23] ss:$0 sm:$0xff] }
 0x201   : > { %v785_v22 = vpack.c.bf16 %v776_v20, %v775_v19  ;;  %1613 = vmatpush3.bf16.msra.mxu1 %v2500_v29 }
 0x202   : > { %1606 = vmatprep.subr.bf16.mxu1 %v1742_v23 }
 0x203   : > { %1564 = vmatprep.mubr.bf16.mxu1 %v785_v22 }
 0x204   : > { %1565 = vmatmul.mubr.bf16.gmra.mrb[12].mxu1 %v786_v21 }
 0x205   : > { %1614 = vmatpush3.bf16.msra.mxu1 %v1742_v23 }
 0x206   : > { %1607 = vmatprep.subr.bf16.mxu1 %v1743_v24 }
 0x209   : > { %1615 = vmatpush3.bf16.msra.mxu1 %v1743_v24 }
 0x2bf   : > { %v1554_v26 = vpop.f32.mrb[0].mxu1 }
 0x2c0   : > { %v901_v27 = vadd.f32 %v1554_v26, %v1428_v25  ;;  %v892_v28 = vpop.f32.mrb[1].mxu1 }
 0x2c1   : > { %v893_v30 = vadd.f32 %v1428_v25, %v892_v28  ;;  %v1555_v31 = vpop.f32.mrb[2].mxu1 }
 0x2c2   : > { %v904_v29 = vadd.f32 %v1555_v31, %v1428_v25  ;;  %v895_v32 = vpop.f32.mrb[3].mxu1  ;;  %v957_v34 = vmax.f32 %v901_v27, 0.0 }
 0x2c3   : > { %v896_v33 = vadd.f32 %v1428_v25, %v895_v32  ;;  %v955_v36 = vmax.f32 %v893_v30, 0.0 }
 0x2c4   : > { %v958_v35 = vmax.f32 %v904_v29, 0.0 }
 0x2c5   : > { %v956_v37 = vmax.f32 %v896_v33, 0.0 }
 0x2c6   : > { %v972_v38 = vpack.c.bf16 %v958_v35, %v957_v34 }
 0x2c7   : > { %v971_v39 = vpack.c.bf16 %v956_v37, %v955_v36  ;;  %v1558_v40 = vpop.f32.mrb[4].mxu1 }
 0x2c8   : > { %v917_v41 = vadd.f32 %v1558_v40, %v1428_v25  ;;  %v908_v42 = vpop.f32.mrb[5].mxu1 }
 0x2c9   : > { %v909_v43 = vadd.f32 %v1428_v25, %v908_v42  ;;  %v1559_v44 = vpop.f32.mrb[6].mxu1  ;;  %1584 = vmatprep.mubr.bf16.mxu0 %v971_v39 }
 0x2ca   : > { %v920_v45 = vadd.f32 %v1559_v44, %v1428_v25  ;;  %v911_v46 = vpop.f32.mrb[7].mxu1  ;;  %1585 = vmatmul.mubr.bf16.vlgmr.msra.gmra.mrb[16].mxu0 %v972_v38  ;;  %v961_v48 = vmax.f32 %v917_v41, 0.0 }
 0x2cb   : > { %v912_v47 = vadd.f32 %v1428_v25, %v911_v46  ;;  %v959_v50 = vmax.f32 %v909_v43, 0.0 }
 0x2cc   : > { %v962_v49 = vmax.f32 %v920_v45, 0.0 }
 0x2cd   : > { %v960_v51 = vmax.f32 %v912_v47, 0.0 }
 0x2ce   : > { %v974_v52 = vpack.c.bf16 %v962_v49, %v961_v48 }
 0x2cf   : > { %v973_v53 = vpack.c.bf16 %v960_v51, %v959_v50  ;;  %v1562_v54 = vpop.f32.mrb[8].mxu1 }
 0x2d0   : > { %v933_v55 = vadd.f32 %v1562_v54, %v1428_v25  ;;  %v924_v56 = vpop.f32.mrb[9].mxu1 }
 0x2d1   : > { %v925_v57 = vadd.f32 %v1428_v25, %v924_v56  ;;  %v1563_v58 = vpop.f32.mrb[10].mxu1  ;;  %1588 = vmatprep.mubr.bf16.mxu0 %v973_v53 }
 0x2d2   : > { %v936_v59 = vadd.f32 %v1563_v58, %v1428_v25  ;;  %v927_v60 = vpop.f32.mrb[11].mxu1  ;;  %1589 = vmatmul.mubr.bf16.gmra.mrb[20].mxu0 %v974_v52  ;;  %v965_v62 = vmax.f32 %v933_v55, 0.0 }
 0x2d3   : > { %v928_v61 = vadd.f32 %v1428_v25, %v927_v60  ;;  %v963_v0 = vmax.f32 %v925_v57, 0.0 }
 0x2d4   : > { %v966_v63 = vmax.f32 %v936_v59, 0.0 }
 0x2d5   : > { %v964_v1 = vmax.f32 %v928_v61, 0.0 }
 0x2d6   : > { %v976_v2 = vpack.c.bf16 %v966_v63, %v965_v62 }
 0x2d7   : > { %v975_v3 = vpack.c.bf16 %v964_v1, %v963_v0  ;;  %v1566_v4 = vpop.f32.mrb[12].mxu1 }
 0x2d8   : > { %v949_v5 = vadd.f32 %v1566_v4, %v1428_v25  ;;  %v940_v6 = vpop.f32.mrb[13].mxu1 }
 0x2d9   : > { %v941_v7 = vadd.f32 %v1428_v25, %v940_v6  ;;  %v1567_v8 = vpop.f32.mrb[14].mxu1  ;;  %1592 = vmatprep.mubr.bf16.mxu1 %v975_v3 }
 0x2da   : > { %v952_v9 = vadd.f32 %v1567_v8, %v1428_v25  ;;  %v943_v10 = vpop.f32.mrb[15].mxu1  ;;  %1593 = vmatmul.mubr.bf16.vlgmr.msra.gmra.mrb[16].mxu1 %v976_v2  ;;  %v969_v12 = vmax.f32 %v949_v5, 0.0 }
 0x2db   : > { %v944_v11 = vadd.f32 %v1428_v25, %v943_v10  ;;  %v967_v14 = vmax.f32 %v941_v7, 0.0 }
 0x2dc   : > { %v970_v13 = vmax.f32 %v952_v9, 0.0 }
 0x2dd   : > { %v968_v15 = vmax.f32 %v944_v11, 0.0 }
 0x2de   : > { %v978_v16 = vpack.c.bf16 %v970_v13, %v969_v12 }
 0x2df   : > { %v977_v17 = vpack.c.bf16 %v968_v15, %v967_v14 }
 0x2e1   : > { %1596 = vmatprep.mubr.bf16.mxu1 %v977_v17 }
 0x2e2   : > { %1597 = vmatmul.mubr.bf16.gmra.mrb[20].mxu1 %v978_v16 }
 0x39d   : > { %v1586_v19 = vpop.f32.mrb[16].mxu0 }
 0x39e   : > { %v1093_v20 = vadd.f32 %v1586_v19, %v1437_v18  ;;  %v1084_v21 = vpop.f32.mrb[17].mxu0 }
 0x39f   : > { %v1085_v22 = vadd.f32 %v1437_v18, %v1084_v21  ;;  %v1587_v23 = vpop.f32.mrb[18].mxu0 }
 0x3a0   : > { %1149 = vst [vmem:[%s2537_s16 + $0x10] sm:$0xff] %v1093_v20  ;;  %v1096_v24 = vadd.f32 %v1587_v23, %v1437_v18  ;;  %v1087_v25 = vpop.f32.mrb[19].mxu0 }
 0x3a1   : > { %1147 = vst [vmem:[%s2537_s16] sm:$0xff] %v1085_v22  ;;  %v1088_v26 = vadd.f32 %v1437_v18, %v1087_v25 }
 0x3a2   : > { %1150 = vst [vmem:[%s2537_s16 + $0x18] sm:$0xff] %v1096_v24 }
 0x3a3   : > { %1148 = vst [vmem:[%s2537_s16 + $0x8] sm:$0xff] %v1088_v26 }
 0x3a5   : > { %v1590_v27 = vpop.f32.mrb[20].mxu0 }
 0x3a6   : > { %v1109_v28 = vadd.f32 %v1590_v27, %v1437_v18  ;;  %v1100_v30 = vpop.f32.mrb[21].mxu0 }
 0x3a7   : > { %v1101_v31 = vadd.f32 %v1437_v18, %v1100_v30  ;;  %v1591_v29 = vpop.f32.mrb[22].mxu0 }
 0x3a8   : > { %1153 = vst [vmem:[%s2537_s16 + $0x30] sm:$0xff] %v1109_v28  ;;  %v1112_v32 = vadd.f32 %v1591_v29, %v1437_v18  ;;  %v1103_v33 = vpop.f32.mrb[23].mxu0 }
 0x3a9   : > { %1151 = vst [vmem:[%s2537_s16 + $0x20] sm:$0xff] %v1101_v31  ;;  %v1104_v34 = vadd.f32 %v1437_v18, %v1103_v33 }
 0x3aa   : > { %1154 = vst [vmem:[%s2537_s16 + $0x38] sm:$0xff] %v1112_v32 }
 0x3ab   : > { %1152 = vst [vmem:[%s2537_s16 + $0x28] sm:$0xff] %v1104_v34 }
 0x3ad   : > { %v1594_v35 = vpop.f32.mrb[16].mxu1 }
 0x3ae   : > { %v1125_v36 = vadd.f32 %v1594_v35, %v1437_v18  ;;  %v1116_v37 = vpop.f32.mrb[17].mxu1 }
 0x3af   : > { %v1117_v38 = vadd.f32 %v1437_v18, %v1116_v37  ;;  %v1595_v39 = vpop.f32.mrb[18].mxu1 }
 0x3b0   : > { %1157 = vst [vmem:[%s2537_s16 + $0x50] sm:$0xff] %v1125_v36  ;;  %v1128_v40 = vadd.f32 %v1595_v39, %v1437_v18  ;;  %v1119_v41 = vpop.f32.mrb[19].mxu1 }
 0x3b1   : > { %1155 = vst [vmem:[%s2537_s16 + $0x40] sm:$0xff] %v1117_v38  ;;  %v1120_v42 = vadd.f32 %v1437_v18, %v1119_v41 }
 0x3b2   : > { %1158 = vst [vmem:[%s2537_s16 + $0x58] sm:$0xff] %v1128_v40 }
 0x3b3   : > { %1156 = vst [vmem:[%s2537_s16 + $0x48] sm:$0xff] %v1120_v42 }
 0x3b5   : > { %v1598_v43 = vpop.f32.mrb[20].mxu1 }
 0x3b6   : > { %v1141_v44 = vadd.f32 %v1598_v43, %v1437_v18  ;;  %v1132_v45 = vpop.f32.mrb[21].mxu1 }
 0x3b7   : > { %v1133_v46 = vadd.f32 %v1437_v18, %v1132_v45  ;;  %v1599_v47 = vpop.f32.mrb[22].mxu1 }
 0x3b8   : > { %1161 = vst [vmem:[%s2537_s16 + $0x70] sm:$0xff] %v1141_v44  ;;  %v1144_v48 = vadd.f32 %v1599_v47, %v1437_v18  ;;  %v1135_v49 = vpop.f32.mrb[23].mxu1 }
 0x3b9   : > { %1159 = vst [vmem:[%s2537_s16 + $0x60] sm:$0xff] %v1133_v46  ;;  %v1136_v50 = vadd.f32 %v1437_v18, %v1135_v49 }
 0x3ba   : > { %1162 = vst [vmem:[%s2537_s16 + $0x78] sm:$0xff] %v1144_v48 }
 0x3bb   : > { %1160 = vst [vmem:[%s2537_s16 + $0x68] sm:$0xff] %v1136_v50 }
 0x3bc   : > { %1967 = shalt.err (!%p1964_p5)
}
 0x3bd   : > { %s1968_s3 = scalar_lea.hbm %s2557_s1, 2048  ;;  %s1972_s10 = scalar_lea.hbm %s2618_s7, 4096 }
 0x3be   : > { %p1969_p13 = scmp.ne.s32.totalorder %s2557_s1, %s1968_s3  ;;  %p1973_p10 = scmp.lt.u32.totalorder %s2557_s1, %s2618_s7 }
 0x3bf   : > { %p1974_p3 = scmp.lt.u32.totalorder %s1972_s10, %s1968_s3  ;;  %p1976_p7 = scmp.lt.u32.totalorder %s1968_s3, %s2557_s1 }
 0x3c0   : > { %p1970_p2 = pnand %p1969_p13, %p2665_p12 }
 0x3c1   : > { %p1975_p4 = por %p1974_p3, %p1973_p10 }
 0x3c2   : > { %p1971_p9 = pneg %p1970_p2 }
 0x3c3   : > { %p1977_p8 = por %p1976_p7, %p1975_p4 }
 0x3c5   : > { %p1978_p1 = pnand %p1977_p8, %p1971_p9 }
 0x3c7   : > { %1981 = shalt.err (!%p1978_p1)
}
 0x3c8   : > { %s2060_s30 = smov 128   ;;  %s2061_s5 = smov 8  }
 0x3c9   : > { %1630 = dma.vmem_to_hbm [thread:$0]  (%p2665_p12), %s2559_s12, 2048, %s2557_s1, %s1164_s27, %s2060_s30, %s2060_s30, %s2061_s5  }
 0x3ca PF: > { %s2666_s19 = sld [smem:[#allocation20_spill]]  ;;  %s2667_s13 = sld [smem:[#allocation25_spill]] }
 0x3cb   : > { %s2668_s23 = sld [smem:[#allocation22_spill]] }
 0x3d0   : > { %s1194_s16 = sand.u32 1, %s2666_s19   ;;  %p2669_p11 = scmp.ne.s32.totalorder %s2667_s13, 0 }
 0x3d1   : > { %p2670_p0 = scmp.ge.s32.totalorder %s2668_s23, 2  ;;  %s1195_s22 = scalar_lea.sflag [#allocation4], %s1194_s16 }
 0x3d3   : > { %p1655_p6 = pnand %p2670_p0, %p2669_p11 }
 0x3d5   : > { %2023 = dma.done.wait (!%p1655_p6), %s1195_s22, 2048  }
 0x3d6   : > { %2025 = vsyncadd (!%p1655_p6), %s1195_s22, 4294965248  ;;  %s32_s29 = sadd.s32 1, %s2668_s23   ;;  %s2671_s17 = sld [smem:[#allocation21_spill]] }
 0x3d7   : > { %p29_p5 = scmp.ge.s32.totalorder %s32_s29, 4   ;;  %s2672_s26 = sld [smem:[#allocation24_spill]] }
 0x3d8   : > { %s2673_s14 = sld [smem:[#allocation23_spill]]  ;;  %s2674_s24 = smov %s2032_s25 }
 0x3d9   : > { %s2676_s27 = smov %s2044_s28  ;;  %31 = sbr.rel (!%p29_p5) target bundleno = 16 (0x10), region = 165 }
 0x3dc   : > { %s2675_s25 = smov %s2671_s17 }
 0x3de   : > { %s2677_s28 = smov %s2673_s14 }
 0x3e0   :  { %1200 = vsyncpa [#allocation3], 1 }
 0x3e1   :  { %1202 = vsyncpa [#allocation3 + $0x1], 1 }
 0x3e2   :  { %1203 = vsyncpa [#allocation6], 1 }
 0x3e3   :  { %1205 = vsyncpa [#allocation6 + $0x1], 1 }
 0x3e4   :  { %1206 = vsyncpa [#allocation9], 1 }
 0x3e5   :  { %1208 = vsyncpa [#allocation9 + $0x1], 1 }
 0x3e6   :  { %1209 = vsyncpa [#allocation12], 1 }
 0x3e7   :  { %1211 = vsyncpa [#allocation12 + $0x1], 1 }
 0x3e8   :  { %1212 = vsyncpa [#allocation4], 1 }
 0x3e9   :  { %1214 = vsyncpa [#allocation4 + $0x1], 1 }

</bundles_post_ra>
